<compile_context>
chip_gen: v7x
topology: tpu7x:2x2x1
jax: 0.10.0
libtpu: 0.0.40
codegen_flags: <defaults>
</compile_context>

<pallas_src>
import jax
import jax.numpy as jnp
from jax.experimental import pallas as pl
from jax.experimental.pallas import tpu as pltpu

INPUT_SIZE = 2
HIDDEN_SIZE = 4
OUTPUT_SIZE = 1

LANE = 128   # lane width
SUB = 8      # f32 sublanes per vreg

# Offsets into the packed parameter vector (row-major flattening).
W1_OFF = 0                                   # (2, 4) ->  8 floats
B1_OFF = W1_OFF + INPUT_SIZE * HIDDEN_SIZE   # (4,)   ->  4 floats
W2_OFF = B1_OFF + HIDDEN_SIZE                # (4, 4) -> 16 floats
B2_OFF = W2_OFF + HIDDEN_SIZE * HIDDEN_SIZE  # (4,)   ->  4 floats
W3_OFF = B2_OFF + HIDDEN_SIZE                # (4, 1) ->  4 floats
B3_OFF = W3_OFF + HIDDEN_SIZE * OUTPUT_SIZE  # (1,)   ->  1 float
N_PARAMS = B3_OFF + 1                        # 37


def mlp_kernel(params_ref, x_ref, o_ref):
    """params_ref: SMEM f32[37]
       x_ref:      VMEM (INPUT_SIZE,  TILE_S, 128)
       o_ref:      VMEM (OUTPUT_SIZE, TILE_S, 128)"""
    # Hoist all 37 SMEM scalar reads / broadcasts to the top of the body so
    # the scheduler can overlap them with the DMA wait.
    w1 = [[params_ref[W1_OFF + i * HIDDEN_SIZE + j] for j in range(HIDDEN_SIZE)]
          for i in range(INPUT_SIZE)]
    b1 = [params_ref[B1_OFF + j] for j in range(HIDDEN_SIZE)]
    w2 = [[params_ref[W2_OFF + i * HIDDEN_SIZE + j] for j in range(HIDDEN_SIZE)]
          for i in range(HIDDEN_SIZE)]
    b2 = [params_ref[B2_OFF + j] for j in range(HIDDEN_SIZE)]
    w3 = [params_ref[W3_OFF + i] for i in range(HIDDEN_SIZE)]
    b3 = params_ref[B3_OFF]

    # Dense (TILE_S, 128) slabs — full sublane + lane occupancy.
    x_rows = [x_ref[i] for i in range(INPUT_SIZE)]

    # Layer 1: h1_j = relu(sum_i x_i * w1[i, j] + b1[j])   (unrolled VPU FMAs)
    h1 = []
    for j in range(HIDDEN_SIZE):
        acc = x_rows[0] * w1[0][j]
        for i in range(1, INPUT_SIZE):
            acc = acc + x_rows[i] * w1[i][j]
        h1.append(jnp.maximum(acc + b1[j], 0.0))

    # Layer 2: h2_j = relu(sum_i h1_i * w2[i, j] + b2[j])
    h2 = []
    for j in range(HIDDEN_SIZE):
        acc = h1[0] * w2[0][j]
        for i in range(1, HIDDEN_SIZE):
            acc = acc + h1[i] * w2[i][j]
        h2.append(jnp.maximum(acc + b2[j], 0.0))

    # Output layer: y = sum_i h2_i * w3[i] + b3
    out = h2[0] * w3[0]
    for i in range(1, HIDDEN_SIZE):
        out = out + h2[i] * w3[i]
    o_ref[0] = (out + b3).astype(o_ref.dtype)


def pack_params(params):
    w1, b1, w2, b2, w3, b3 = params
    return jnp.concatenate(
        [w1.reshape(-1), b1.reshape(-1),
         w2.reshape(-1), b2.reshape(-1),
         w3.reshape(-1), b3.reshape(-1)]).astype(jnp.float32)


def _choose_tiling(batch):
    """Returns (tile_s, n_sub) with n_sub a multiple of tile_s, tile_s % 8 == 0."""
    n_sub = pl.cdiv(batch, LANE)               # 128-lane rows needed
    n_sub = pl.cdiv(n_sub, SUB) * SUB          # round up to whole vreg sublanes
    # ~2 MiB of input + ~1 MiB of output per grid step (f32) at the cap;
    # double-buffered total stays well under v7x's scoped VMEM limit.
    MAX_TILE_S = 2048
    if n_sub <= SUB:
        tile_s = SUB                            # single minimum-size tile
    elif n_sub <= 2 * MAX_TILE_S:
        # at least 2 grid steps so both v7x TensorCores get work
        tile_s = pl.cdiv(pl.cdiv(n_sub, 2), SUB) * SUB
    else:
        tile_s = MAX_TILE_S
    n_sub = pl.cdiv(n_sub, tile_s) * tile_s
    return tile_s, n_sub


def net_forward(x, params):
    """x: (B, INPUT_SIZE) f32, matching the PyTorch module. Returns (B, OUTPUT_SIZE)."""
    B = x.shape[0]
    packed = pack_params(params)

    tile_s, n_sub = _choose_tiling(B)
    B_pad = n_sub * LANE

    # Feature-major, (feature, sublane-row, lane) dense layout.
    # TODO(synk): accept a feature-major (INPUT_SIZE, B) input upstream to drop
    # this transpose entirely (it is the only extra HBM pass left).
    x_t = x.astype(jnp.float32).T                      # (INPUT_SIZE, B)
    if B_pad != B:
        x_t = jnp.pad(x_t, ((0, 0), (0, B_pad - B)))   # pad only the remainder
    x3 = x_t.reshape(INPUT_SIZE, n_sub, LANE)

    grid = (n_sub // tile_s,)
    out3 = pl.pallas_call(
        mlp_kernel,
        out_shape=jax.ShapeDtypeStruct((OUTPUT_SIZE, n_sub, LANE), jnp.float32),
        grid_spec=pltpu.PrefetchScalarGridSpec(
            num_scalar_prefetch=1,                     # packed params -> SMEM
            grid=grid,
            in_specs=[pl.BlockSpec((INPUT_SIZE, tile_s, LANE),
                                   lambda i, p: (0, i, 0))],
            out_specs=pl.BlockSpec((OUTPUT_SIZE, tile_s, LANE),
                                   lambda i, p: (0, i, 0)),
        ),
        compiler_params=pltpu.CompilerParams(
            dimension_semantics=("parallel",)),        # shard batch across v7x's 2 TCs
    )(packed, x3)

    return out3.reshape(OUTPUT_SIZE, B_pad)[:, :B].T


def init_params(key):
    """Deterministic init mimicking nn.Linear's U(-1/sqrt(fan_in), 1/sqrt(fan_in))."""
    ks = jax.random.split(key, 6)

    def uniform(k, shape, fan_in):
        bound = 1.0 / jnp.sqrt(jnp.float32(fan_in))
        return jax.random.uniform(k, shape, jnp.float32, -bound, bound)

    # Stored as (in_features, out_features); biases as (1, out).
    w1 = uniform(ks[0], (INPUT_SIZE, HIDDEN_SIZE), INPUT_SIZE)
    b1 = uniform(ks[1], (1, HIDDEN_SIZE), INPUT_SIZE)
    w2 = uniform(ks[2], (HIDDEN_SIZE, HIDDEN_SIZE), HIDDEN_SIZE)
    b2 = uniform(ks[3], (1, HIDDEN_SIZE), HIDDEN_SIZE)
    w3 = uniform(ks[4], (HIDDEN_SIZE, OUTPUT_SIZE), HIDDEN_SIZE)
    b3 = uniform(ks[5], (1, OUTPUT_SIZE), HIDDEN_SIZE)
    return (w1, b1, w2, b2, w3, b3)


def reference_forward(x, params):
    w1, b1, w2, b2, w3, b3 = params
    h1 = jnp.maximum(x @ w1 + b1, 0.0)
    h2 = jnp.maximum(h1 @ w2 + b2, 0.0)
    return h2 @ w3 + b3


if __name__ == "__main__":
    key = jax.random.PRNGKey(0)
    pkey, xkey1, xkey2 = jax.random.split(key, 3)
    params = init_params(pkey)

    # Small case (single tile, padded remainder).
    batch = 8
    x_small = jax.random.normal(xkey1, (batch, INPUT_SIZE), jnp.float32)
    out_small = jax.block_until_ready(net_forward(x_small, params))
    ref_small = reference_forward(x_small, params)
    assert out_small.shape == (batch, OUTPUT_SIZE), out_small.shape
    assert jnp.allclose(out_small, ref_small, atol=1e-5, rtol=1e-5), "small-batch mismatch"

    # Multi-tile case (grid > 1, exercises the parallel batch split).
    batch2 = 2048
    x_big = jax.random.normal(xkey2, (batch2, INPUT_SIZE), jnp.float32)
    out_big = jax.block_until_ready(net_forward(x_big, params))
    ref_big = reference_forward(x_big, params)
    assert out_big.shape == (batch2, OUTPUT_SIZE), out_big.shape
    assert jnp.allclose(out_big, ref_big, atol=1e-5, rtol=1e-5), "multi-tile mismatch"

    print("KERNEL_OK")
</pallas_src>

<mosaic_0001>
module attributes {stable_mosaic.version = 11 : i64} {
  func.func @mlp_kernel(%arg0: i32, %arg1: memref<37xf32, #tpu.memory_space<smem>>, %arg2: memref<2x8x128xf32, #tpu.memory_space<vmem>>, %arg3: memref<1x8x128xf32, #tpu.memory_space<vmem>>) attributes {dimension_semantics = [#tpu.dimension_semantics<parallel>], iteration_bounds = array<i64: 1>, scalar_prefetch = 1 : i64, scratch_operands = 0 : i64, tpu.core_type = #tpu.core_type<tc>, window_params = [{transform_indices = @transform_0, window_bounds = array<i64: 2, 8, 128>}, {transform_indices = @transform_1, window_bounds = array<i64: 1, 8, 128>}]} {
    %c0 = arith.constant 0 : index
    %0 = memref.load %arg1[%c0] : memref<37xf32, #tpu.memory_space<smem>>
    %c1 = arith.constant 1 : index
    %1 = memref.load %arg1[%c1] : memref<37xf32, #tpu.memory_space<smem>>
    %c2 = arith.constant 2 : index
    %2 = memref.load %arg1[%c2] : memref<37xf32, #tpu.memory_space<smem>>
    %c3 = arith.constant 3 : index
    %3 = memref.load %arg1[%c3] : memref<37xf32, #tpu.memory_space<smem>>
    %c4 = arith.constant 4 : index
    %4 = memref.load %arg1[%c4] : memref<37xf32, #tpu.memory_space<smem>>
    %c5 = arith.constant 5 : index
    %5 = memref.load %arg1[%c5] : memref<37xf32, #tpu.memory_space<smem>>
    %c6 = arith.constant 6 : index
    %6 = memref.load %arg1[%c6] : memref<37xf32, #tpu.memory_space<smem>>
    %c7 = arith.constant 7 : index
    %7 = memref.load %arg1[%c7] : memref<37xf32, #tpu.memory_space<smem>>
    %c8 = arith.constant 8 : index
    %8 = memref.load %arg1[%c8] : memref<37xf32, #tpu.memory_space<smem>>
    %c9 = arith.constant 9 : index
    %9 = memref.load %arg1[%c9] : memref<37xf32, #tpu.memory_space<smem>>
    %c10 = arith.constant 10 : index
    %10 = memref.load %arg1[%c10] : memref<37xf32, #tpu.memory_space<smem>>
    %c11 = arith.constant 11 : index
    %11 = memref.load %arg1[%c11] : memref<37xf32, #tpu.memory_space<smem>>
    %c12 = arith.constant 12 : index
    %12 = memref.load %arg1[%c12] : memref<37xf32, #tpu.memory_space<smem>>
    %c13 = arith.constant 13 : index
    %13 = memref.load %arg1[%c13] : memref<37xf32, #tpu.memory_space<smem>>
    %c14 = arith.constant 14 : index
    %14 = memref.load %arg1[%c14] : memref<37xf32, #tpu.memory_space<smem>>
    %c15 = arith.constant 15 : index
    %15 = memref.load %arg1[%c15] : memref<37xf32, #tpu.memory_space<smem>>
    %c16 = arith.constant 16 : index
    %16 = memref.load %arg1[%c16] : memref<37xf32, #tpu.memory_space<smem>>
    %c17 = arith.constant 17 : index
    %17 = memref.load %arg1[%c17] : memref<37xf32, #tpu.memory_space<smem>>
    %c18 = arith.constant 18 : index
    %18 = memref.load %arg1[%c18] : memref<37xf32, #tpu.memory_space<smem>>
    %c19 = arith.constant 19 : index
    %19 = memref.load %arg1[%c19] : memref<37xf32, #tpu.memory_space<smem>>
    %c20 = arith.constant 20 : index
    %20 = memref.load %arg1[%c20] : memref<37xf32, #tpu.memory_space<smem>>
    %c21 = arith.constant 21 : index
    %21 = memref.load %arg1[%c21] : memref<37xf32, #tpu.memory_space<smem>>
    %c22 = arith.constant 22 : index
    %22 = memref.load %arg1[%c22] : memref<37xf32, #tpu.memory_space<smem>>
    %c23 = arith.constant 23 : index
    %23 = memref.load %arg1[%c23] : memref<37xf32, #tpu.memory_space<smem>>
    %c24 = arith.constant 24 : index
    %24 = memref.load %arg1[%c24] : memref<37xf32, #tpu.memory_space<smem>>
    %c25 = arith.constant 25 : index
    %25 = memref.load %arg1[%c25] : memref<37xf32, #tpu.memory_space<smem>>
    %c26 = arith.constant 26 : index
    %26 = memref.load %arg1[%c26] : memref<37xf32, #tpu.memory_space<smem>>
    %c27 = arith.constant 27 : index
    %27 = memref.load %arg1[%c27] : memref<37xf32, #tpu.memory_space<smem>>
    %c28 = arith.constant 28 : index
    %28 = memref.load %arg1[%c28] : memref<37xf32, #tpu.memory_space<smem>>
    %c29 = arith.constant 29 : index
    %29 = memref.load %arg1[%c29] : memref<37xf32, #tpu.memory_space<smem>>
    %c30 = arith.constant 30 : index
    %30 = memref.load %arg1[%c30] : memref<37xf32, #tpu.memory_space<smem>>
    %c31 = arith.constant 31 : index
    %31 = memref.load %arg1[%c31] : memref<37xf32, #tpu.memory_space<smem>>
    %c32 = arith.constant 32 : index
    %32 = memref.load %arg1[%c32] : memref<37xf32, #tpu.memory_space<smem>>
    %c33 = arith.constant 33 : index
    %33 = memref.load %arg1[%c33] : memref<37xf32, #tpu.memory_space<smem>>
    %c34 = arith.constant 34 : index
    %34 = memref.load %arg1[%c34] : memref<37xf32, #tpu.memory_space<smem>>
    %c35 = arith.constant 35 : index
    %35 = memref.load %arg1[%c35] : memref<37xf32, #tpu.memory_space<smem>>
    %c36 = arith.constant 36 : index
    %36 = memref.load %arg1[%c36] : memref<37xf32, #tpu.memory_space<smem>>
    %c0_0 = arith.constant 0 : index
    %c0_1 = arith.constant 0 : index
    %c0_2 = arith.constant 0 : index
    %37 = vector.load %arg2[%c0_0, %c0_1, %c0_2] : memref<2x8x128xf32, #tpu.memory_space<vmem>>, vector<1x8x128xf32>
    %38 = vector.shape_cast %37 : vector<1x8x128xf32> to vector<8x128xf32>
    %c1_3 = arith.constant 1 : index
    %c0_4 = arith.constant 0 : index
    %c0_5 = arith.constant 0 : index
    %39 = vector.load %arg2[%c1_3, %c0_4, %c0_5] : memref<2x8x128xf32, #tpu.memory_space<vmem>>, vector<1x8x128xf32>
    %40 = vector.shape_cast %39 : vector<1x8x128xf32> to vector<8x128xf32>
    %41 = vector.broadcast %0 : f32 to vector<8x128xf32>
    %42 = arith.mulf %38, %41 : vector<8x128xf32>
    %43 = vector.broadcast %4 : f32 to vector<8x128xf32>
    %44 = arith.mulf %40, %43 : vector<8x128xf32>
    %45 = arith.addf %42, %44 : vector<8x128xf32>
    %46 = vector.broadcast %8 : f32 to vector<8x128xf32>
    %47 = arith.addf %45, %46 : vector<8x128xf32>
    %cst = arith.constant 0.000000e+00 : f32
    %48 = vector.broadcast %cst : f32 to vector<8x128xf32>
    %49 = arith.maximumf %47, %48 : vector<8x128xf32>
    %50 = vector.broadcast %1 : f32 to vector<8x128xf32>
    %51 = arith.mulf %38, %50 : vector<8x128xf32>
    %52 = vector.broadcast %5 : f32 to vector<8x128xf32>
    %53 = arith.mulf %40, %52 : vector<8x128xf32>
    %54 = arith.addf %51, %53 : vector<8x128xf32>
    %55 = vector.broadcast %9 : f32 to vector<8x128xf32>
    %56 = arith.addf %54, %55 : vector<8x128xf32>
    %cst_6 = arith.constant 0.000000e+00 : f32
    %57 = vector.broadcast %cst_6 : f32 to vector<8x128xf32>
    %58 = arith.maximumf %56, %57 : vector<8x128xf32>
    %59 = vector.broadcast %2 : f32 to vector<8x128xf32>
    %60 = arith.mulf %38, %59 : vector<8x128xf32>
    %61 = vector.broadcast %6 : f32 to vector<8x128xf32>
    %62 = arith.mulf %40, %61 : vector<8x128xf32>
    %63 = arith.addf %60, %62 : vector<8x128xf32>
    %64 = vector.broadcast %10 : f32 to vector<8x128xf32>
    %65 = arith.addf %63, %64 : vector<8x128xf32>
    %cst_7 = arith.constant 0.000000e+00 : f32
    %66 = vector.broadcast %cst_7 : f32 to vector<8x128xf32>
    %67 = arith.maximumf %65, %66 : vector<8x128xf32>
    %68 = vector.broadcast %3 : f32 to vector<8x128xf32>
    %69 = arith.mulf %38, %68 : vector<8x128xf32>
    %70 = vector.broadcast %7 : f32 to vector<8x128xf32>
    %71 = arith.mulf %40, %70 : vector<8x128xf32>
    %72 = arith.addf %69, %71 : vector<8x128xf32>
    %73 = vector.broadcast %11 : f32 to vector<8x128xf32>
    %74 = arith.addf %72, %73 : vector<8x128xf32>
    %cst_8 = arith.constant 0.000000e+00 : f32
    %75 = vector.broadcast %cst_8 : f32 to vector<8x128xf32>
    %76 = arith.maximumf %74, %75 : vector<8x128xf32>
    %77 = vector.broadcast %12 : f32 to vector<8x128xf32>
    %78 = arith.mulf %49, %77 : vector<8x128xf32>
    %79 = vector.broadcast %16 : f32 to vector<8x128xf32>
    %80 = arith.mulf %58, %79 : vector<8x128xf32>
    %81 = arith.addf %78, %80 : vector<8x128xf32>
    %82 = vector.broadcast %20 : f32 to vector<8x128xf32>
    %83 = arith.mulf %67, %82 : vector<8x128xf32>
    %84 = arith.addf %81, %83 : vector<8x128xf32>
    %85 = vector.broadcast %24 : f32 to vector<8x128xf32>
    %86 = arith.mulf %76, %85 : vector<8x128xf32>
    %87 = arith.addf %84, %86 : vector<8x128xf32>
    %88 = vector.broadcast %28 : f32 to vector<8x128xf32>
    %89 = arith.addf %87, %88 : vector<8x128xf32>
    %cst_9 = arith.constant 0.000000e+00 : f32
    %90 = vector.broadcast %cst_9 : f32 to vector<8x128xf32>
    %91 = arith.maximumf %89, %90 : vector<8x128xf32>
    %92 = vector.broadcast %13 : f32 to vector<8x128xf32>
    %93 = arith.mulf %49, %92 : vector<8x128xf32>
    %94 = vector.broadcast %17 : f32 to vector<8x128xf32>
    %95 = arith.mulf %58, %94 : vector<8x128xf32>
    %96 = arith.addf %93, %95 : vector<8x128xf32>
    %97 = vector.broadcast %21 : f32 to vector<8x128xf32>
    %98 = arith.mulf %67, %97 : vector<8x128xf32>
    %99 = arith.addf %96, %98 : vector<8x128xf32>
    %100 = vector.broadcast %25 : f32 to vector<8x128xf32>
    %101 = arith.mulf %76, %100 : vector<8x128xf32>
    %102 = arith.addf %99, %101 : vector<8x128xf32>
    %103 = vector.broadcast %29 : f32 to vector<8x128xf32>
    %104 = arith.addf %102, %103 : vector<8x128xf32>
    %cst_10 = arith.constant 0.000000e+00 : f32
    %105 = vector.broadcast %cst_10 : f32 to vector<8x128xf32>
    %106 = arith.maximumf %104, %105 : vector<8x128xf32>
    %107 = vector.broadcast %14 : f32 to vector<8x128xf32>
    %108 = arith.mulf %49, %107 : vector<8x128xf32>
    %109 = vector.broadcast %18 : f32 to vector<8x128xf32>
    %110 = arith.mulf %58, %109 : vector<8x128xf32>
    %111 = arith.addf %108, %110 : vector<8x128xf32>
    %112 = vector.broadcast %22 : f32 to vector<8x128xf32>
    %113 = arith.mulf %67, %112 : vector<8x128xf32>
    %114 = arith.addf %111, %113 : vector<8x128xf32>
    %115 = vector.broadcast %26 : f32 to vector<8x128xf32>
    %116 = arith.mulf %76, %115 : vector<8x128xf32>
    %117 = arith.addf %114, %116 : vector<8x128xf32>
    %118 = vector.broadcast %30 : f32 to vector<8x128xf32>
    %119 = arith.addf %117, %118 : vector<8x128xf32>
    %cst_11 = arith.constant 0.000000e+00 : f32
    %120 = vector.broadcast %cst_11 : f32 to vector<8x128xf32>
    %121 = arith.maximumf %119, %120 : vector<8x128xf32>
    %122 = vector.broadcast %15 : f32 to vector<8x128xf32>
    %123 = arith.mulf %49, %122 : vector<8x128xf32>
    %124 = vector.broadcast %19 : f32 to vector<8x128xf32>
    %125 = arith.mulf %58, %124 : vector<8x128xf32>
    %126 = arith.addf %123, %125 : vector<8x128xf32>
    %127 = vector.broadcast %23 : f32 to vector<8x128xf32>
    %128 = arith.mulf %67, %127 : vector<8x128xf32>
    %129 = arith.addf %126, %128 : vector<8x128xf32>
    %130 = vector.broadcast %27 : f32 to vector<8x128xf32>
    %131 = arith.mulf %76, %130 : vector<8x128xf32>
    %132 = arith.addf %129, %131 : vector<8x128xf32>
    %133 = vector.broadcast %31 : f32 to vector<8x128xf32>
    %134 = arith.addf %132, %133 : vector<8x128xf32>
    %cst_12 = arith.constant 0.000000e+00 : f32
    %135 = vector.broadcast %cst_12 : f32 to vector<8x128xf32>
    %136 = arith.maximumf %134, %135 : vector<8x128xf32>
    %137 = vector.broadcast %32 : f32 to vector<8x128xf32>
    %138 = arith.mulf %91, %137 : vector<8x128xf32>
    %139 = vector.broadcast %33 : f32 to vector<8x128xf32>
    %140 = arith.mulf %106, %139 : vector<8x128xf32>
    %141 = arith.addf %138, %140 : vector<8x128xf32>
    %142 = vector.broadcast %34 : f32 to vector<8x128xf32>
    %143 = arith.mulf %121, %142 : vector<8x128xf32>
    %144 = arith.addf %141, %143 : vector<8x128xf32>
    %145 = vector.broadcast %35 : f32 to vector<8x128xf32>
    %146 = arith.mulf %136, %145 : vector<8x128xf32>
    %147 = arith.addf %144, %146 : vector<8x128xf32>
    %148 = vector.broadcast %36 : f32 to vector<8x128xf32>
    %149 = arith.addf %147, %148 : vector<8x128xf32>
    %c0_13 = arith.constant 0 : index
    %c0_14 = arith.constant 0 : index
    %c0_15 = arith.constant 0 : index
    %150 = vector.load %arg3[%c0_13, %c0_14, %c0_15] : memref<1x8x128xf32, #tpu.memory_space<vmem>>, vector<1x8x128xf32>
    %151 = vector.shape_cast %150 : vector<1x8x128xf32> to vector<8x128xf32>
    %152 = vector.shape_cast %149 : vector<8x128xf32> to vector<1x8x128xf32>
    tpu.vector_store %arg3[%c0_13, %c0_14, %c0_15], %152 {strides = array<i32>} : memref<1x8x128xf32, #tpu.memory_space<vmem>>, vector<1x8x128xf32>,
    return
  }
  func.func @transform_0(%arg0: i32, %arg1: memref<37xf32, #tpu.memory_space<smem>>) -> (i32, i32, i32) {
    %c0_i32 = arith.constant 0 : i32
    %c0_i32_0 = arith.constant 0 : i32
    %c0_i32_1 = arith.constant 0 : i32
    return %c0_i32, %arg0, %c0_i32_0 : i32, i32, i32
  }
  func.func @transform_1(%arg0: i32, %arg1: memref<37xf32, #tpu.memory_space<smem>>) -> (i32, i32, i32) {
    %c0_i32 = arith.constant 0 : i32
    %c0_i32_0 = arith.constant 0 : i32
    %c0_i32_1 = arith.constant 0 : i32
    return %c0_i32, %arg0, %c0_i32_0 : i32, i32, i32
  }
}

</mosaic_0001>

<bundles_post_ra>
// kernel: tpu_custom_call.1
= control target key start
LH: loop header
LB: loop body
LE: loop exit
PB: predicated region body
PF: predicated region fallthrough
CT: control target
= control target key end

     0   :  { %s429_s0 = inlined_call_operand.hbm [shape: f32[37], index: 0, kind: input, shape index: {}]   ;;  %s430_s1 = inlined_call_operand.hbm [shape: f32[2,8,128], index: 1, kind: input, shape index: {}]   ;;  %s431_s2 = inlined_call_operand.hbm [shape: f32[1,8,128], index: 2, kind: output, shape index: {}]  }
   0x1   :  { %s226_s11 = scalar_lea.hbm %s429_s0, 16 }
   0x2   :  { %p227_p0 = scmp.ne.s32.totalorder %s429_s0, %s226_s11  ;;  %p230_p1 = scmp.lt.u32.totalorder %s226_s11, %s429_s0 }
   0x4   :  { %p232_p2 = pnand %p230_p1, %p227_p0 }
   0x6   :  { %235 = shalt.err (!%p232_p2)  }
   0x7   :  { %s286_s16 = smov [#allocation3]  }
   0x8   :  { %8 = dma.hbm_to_smem %s429_s0, 16, %s286_s16, [#allocation2] }
   0x9   :  { %280 = dma.done.wait [#allocation2], 16 }
   0xa   :  { %281 = vsyncadd [#allocation2], 4294967280 }
   0xb   :  { %10 = sfence }
   0xc   :  { %11 = vsyncpa [#allocation5], 0 }
   0xd   :  { %12 = vsyncpa [#allocation6], 0  ;;  %s287_s19 = smov [#allocation4]   ;;  %s236_s23 = scalar_lea.hbm %s430_s1, 256 }
   0xe   :  { %s18_s20 = sshll.u32 %s287_s19, 4  ;;  %p237_p3 = scmp.ne.s32.totalorder %s430_s1, %s236_s23  ;;  %s19_s20 = int_to_ptr.vmem [resolvable:$true] %s18_s20 }
   0xf   :  { %p240_p4 = scmp.lt.u32.totalorder %s236_s23, %s430_s1 }
  0x11   :  { %p242_p5 = pnand %p240_p4, %p237_p3 }
  0x13   :  { %245 = shalt.err (!%p242_p5)
}
  0x14   :  { %s246_s0 = scalar_lea.vmem %s19_s20, 256  ;;  %p251_p7 = scmp.lt.s32.totalorder %s19_s20, %s19_s20 }
  0x15   :  { %p247_p6 = scmp.ne.s32.totalorder %s19_s20, %s246_s0  ;;  %p252_p8 = scmp.lt.s32.totalorder %s246_s0, %s246_s0 }
  0x17   :  { %p253_p9 = por %p252_p8, %p251_p7 }
  0x19   :  { %p254_p10 = pnand %p253_p9, %p247_p6 }
  0x1b   :  { %257 = shalt.err (!%p254_p10)
}
  0x1c   :  { %s288_s28 = smov 128   ;;  %s289_s29 = smov 8  }
  0x1d   :  { %24 = dma.hbm_to_vmem [thread:$0]  %s430_s1, 256, %s19_s20, [#allocation5], %s288_s28, %s288_s28, %s289_s29  }
  0x1e   :  { %282 = dma.done.wait [#allocation5], 256  }
  0x1f   :  { %283 = vsyncadd [#allocation5], 4294967040  ;;  %s28_s4 = sld [smem:[#allocation3]]  ;;  %s185_s5 = sld [smem:[#allocation3 + $0x1]]  ;;  %v65_v0 = vld [vmem:[#allocation4] sm:$0xff]  ;;  %v67_v1 = vld [vmem:[#allocation4 + $0x8] sm:$0xff] }
  0x20   :  { %s186_s6 = sld [smem:[#allocation3 + $0x2]]  ;;  %s187_s7 = sld [smem:[#allocation3 + $0x3]] }
  0x21   :  { %s188_s8 = sld [smem:[#allocation3 + $0x4]]  ;;  %s189_s9 = sld [smem:[#allocation3 + $0x5]] }
  0x22   :  { %s330_s10 = sld [smem:[#allocation3 + $0x6]]  ;;  %s332_s11 = sld [smem:[#allocation3 + $0x7]] }
  0x23   :  { %s334_s12 = sld [smem:[#allocation3 + $0x8]]  ;;  %s336_s13 = sld [smem:[#allocation3 + $0x9]] }
  0x24   :  { %s338_s14 = sld [smem:[#allocation3 + $0xa]]  ;;  %s340_s15 = sld [smem:[#allocation3 + $0xb]] }
  0x25   :  { %s342_s1 = sld [smem:[#allocation3 + $0xc]]  ;;  %s344_s16 = sld [smem:[#allocation3 + $0xd]]  ;;  %v68_v2 = vstv %s28_s4  ;;  %v76_v3 = vstv %s185_s5 }
  0x26   :  { %s346_s17 = sld [smem:[#allocation3 + $0xe]]  ;;  %s348_s18 = sld [smem:[#allocation3 + $0xf]]  ;;  %v69_v4 = vmul.f32 %v68_v2, %v65_v0  ;;  %v77_v5 = vmul.f32 %v76_v3, %v65_v0  ;;  %v84_v6 = vstv %s186_s6  ;;  %v92_v7 = vstv %s187_s7 }
  0x27   :  { %s350_s19 = sld [smem:[#allocation3 + $0x10]]  ;;  %s352_s20 = sld [smem:[#allocation3 + $0x11]]  ;;  %v70_v8 = vstv %s188_s8  ;;  %v78_v9 = vstv %s189_s9  ;;  %v85_v10 = vmul.f32 %v84_v6, %v65_v0  ;;  %v93_v11 = vmul.f32 %v92_v7, %v65_v0 }
  0x28   :  { %s354_s21 = sld [smem:[#allocation3 + $0x12]]  ;;  %v71_v12 = vmul.f32 %v70_v8, %v67_v1  ;;  %v79_v13 = vmul.f32 %v78_v9, %v67_v1  ;;  %v86_v14 = vstv %s330_s10  ;;  %v94_v15 = vstv %s332_s11  ;;  %s358_s22 = sld [smem:[#allocation3 + $0x14]] }
  0x29   :  { %s360_s23 = sld [smem:[#allocation3 + $0x15]]  ;;  %v73_v16 = vstv %s334_s12  ;;  %v81_v17 = vstv %s336_s13  ;;  %v87_v18 = vmul.f32 %v86_v14, %v67_v1  ;;  %v95_v19 = vmul.f32 %v94_v15, %v67_v1  ;;  %s364_s24 = sld [smem:[#allocation3 + $0x13]] }
  0x2a   :  { %v72_v20 = vadd.f32 %v71_v12, %v69_v4  ;;  %v80_v21 = vadd.f32 %v79_v13, %v77_v5  ;;  %v89_v22 = vstv %s338_s14  ;;  %v97_v23 = vstv %s340_s15  ;;  %s368_s25 = sld [smem:[#allocation3 + $0x18]]  ;;  %s370_s26 = sld [smem:[#allocation3 + $0x19]] }
  0x2b   :  { %v88_v24 = vadd.f32 %v87_v18, %v85_v10  ;;  %v96_v25 = vadd.f32 %v95_v19, %v93_v11  ;;  %v100_v26 = vstv %s342_s1  ;;  %s373_s27 = sld [smem:[#allocation3 + $0x16]]  ;;  %s375_s0 = sld [smem:[#allocation3 + $0x1a]]  ;;  %v114_v29 = vstv %s344_s16 }
  0x2c   :  { %v74_v27 = vadd.f32 %v73_v16, %v72_v20  ;;  %v82_v28 = vadd.f32 %v81_v17, %v80_v21  ;;  %v128_v30 = vstv %s346_s17  ;;  %s379_s28 = sld [smem:[#allocation3 + $0x1c]]  ;;  %s381_s29 = sld [smem:[#allocation3 + $0x1d]]  ;;  %v142_v38 = vstv %s348_s18 }
  0x2d   :  { %v90_v31 = vadd.f32 %v89_v22, %v88_v24  ;;  %v98_v32 = vadd.f32 %v97_v23, %v96_v25  ;;  %v102_v33 = vstv %s350_s19  ;;  %v116_v34 = vstv %s352_s20  ;;  %s385_s30 = sld [smem:[#allocation3 + $0x17]]  ;;  %s389_s3 = sld [smem:[#allocation3 + $0x1b]] }
  0x2e   :  { %v75_v35 = vmax.f32 %v74_v27, 0.0  ;;  %v83_v36 = vmax.f32 %v82_v28, 0.0  ;;  %v130_v37 = vstv %s354_s21  ;;  %s391_s4 = sld [smem:[#allocation3 + $0x1e]]  ;;  %v105_v41 = vstv %s358_s22  ;;  %s395_s5 = sld [smem:[#allocation3 + $0x20]] }
  0x2f   :  { %v91_v39 = vmax.f32 %v90_v31, 0.0  ;;  %v99_v40 = vmax.f32 %v98_v32, 0.0  ;;  %v119_v42 = vstv %s360_s23  ;;  %s397_s6 = sld [smem:[#allocation3 + $0x21]]  ;;  %s401_s7 = sld [smem:[#allocation3 + $0x1f]]  ;;  %v144_v58 = vstv %s364_s24 }
  0x30   :  { %v101_v43 = vmul.f32 %v100_v26, %v75_v35  ;;  %v103_v44 = vmul.f32 %v102_v33, %v83_v36  ;;  %v115_v45 = vmul.f32 %v114_v29, %v75_v35  ;;  %v117_v46 = vmul.f32 %v116_v34, %v83_v36  ;;  %s405_s8 = sld [smem:[#allocation3 + $0x22]]  ;;  %s219_s9 = sld [smem:[#allocation3 + $0x23]] }
  0x31   :  { %v106_v47 = vmul.f32 %v105_v41, %v91_v39  ;;  %v108_v48 = vstv %s368_s25  ;;  %v120_v49 = vmul.f32 %v119_v42, %v91_v39  ;;  %v122_v50 = vstv %s370_s26  ;;  %s220_s10 = sld [smem:[#allocation3 + $0x24]]  ;;  %s290_s11 = smov [#allocation7]  }
  0x32   :  { %v104_v51 = vadd.f32 %v103_v44, %v101_v43  ;;  %v109_v52 = vmul.f32 %v108_v48, %v99_v40  ;;  %v118_v53 = vadd.f32 %v117_v46, %v115_v45  ;;  %v123_v54 = vmul.f32 %v122_v50, %v99_v40  ;;  %s176_s12 = sshll.u32 %s290_s11, 4  ;;  %s177_s12 = int_to_ptr.vmem [resolvable:$true] %s176_s12 }
  0x33   :  { %v111_v55 = vstv %s379_s28  ;;  %v129_v56 = vmul.f32 %v128_v30, %v75_v35  ;;  %v131_v57 = vmul.f32 %v130_v37, %v83_v36  ;;  %v133_v61 = vstv %s373_s27  ;;  %s258_s13 = scalar_lea.vmem %s177_s12, 128  ;;  %p263_p12 = scmp.lt.s32.totalorder %s177_s12, %s177_s12 }
  0x34   :  { %v107_v59 = vadd.f32 %v106_v47, %v104_v51  ;;  %v121_v60 = vadd.f32 %v120_v49, %v118_v53  ;;  %v136_v62 = vstv %s375_s0  ;;  %v125_v63 = vstv %s381_s29  ;;  %p259_p11 = scmp.ne.s32.totalorder %s177_s12, %s258_s13  ;;  %p264_p13 = scmp.lt.s32.totalorder %s258_s13, %s258_s13 }
  0x35   :  { %v132_v0 = vadd.f32 %v131_v57, %v129_v56  ;;  %v134_v1 = vmul.f32 %v133_v61, %v91_v39  ;;  %v137_v2 = vmul.f32 %v136_v62, %v99_v40  ;;  %v143_v5 = vmul.f32 %v142_v38, %v75_v35 }
  0x36   :  { %v110_v3 = vadd.f32 %v109_v52, %v107_v59  ;;  %v124_v4 = vadd.f32 %v123_v54, %v121_v60  ;;  %v145_v6 = vmul.f32 %v144_v58, %v83_v36  ;;  %v139_v8 = vstv %s391_s4  ;;  %p265_p0 = por %p264_p13, %p263_p12 }
  0x37   :  { %v135_v7 = vadd.f32 %v134_v1, %v132_v0  ;;  %v147_v9 = vstv %s385_s30  ;;  %v150_v10 = vstv %s389_s3  ;;  %v156_v17 = vstv %s395_s5 }
  0x38   :  { %v112_v11 = vadd.f32 %v111_v55, %v110_v3  ;;  %v126_v12 = vadd.f32 %v125_v63, %v124_v4  ;;  %v146_v13 = vadd.f32 %v145_v6, %v143_v5  ;;  %v148_v14 = vmul.f32 %v147_v9, %v91_v39  ;;  %p266_p1 = pnand %p265_p0, %p259_p11 }
  0x39   :  { %v138_v15 = vadd.f32 %v137_v2, %v135_v7  ;;  %v151_v16 = vmul.f32 %v150_v10, %v99_v40  ;;  %v158_v18 = vstv %s397_s6  ;;  %v153_v23 = vstv %s401_s7 }
  0x3a   :  { %v113_v19 = vmax.f32 %v112_v11, 0.0  ;;  %v127_v20 = vmax.f32 %v126_v12, 0.0  ;;  %v149_v21 = vadd.f32 %v148_v14, %v146_v13  ;;  %v161_v27 = vstv %s405_s8 }
  0x3b   :  { %v140_v22 = vadd.f32 %v139_v8, %v138_v15  ;;  %v164_v32 = vstv %s219_s9  ;;  %v167_v36 = vstv %s220_s10 }
  0x3c   :  { %v152_v24 = vadd.f32 %v151_v16, %v149_v21  ;;  %v157_v25 = vmul.f32 %v156_v17, %v113_v19  ;;  %v159_v26 = vmul.f32 %v158_v18, %v127_v20 }
  0x3d   :  { %v141_v28 = vmax.f32 %v140_v22, 0.0 }
  0x3e   :  { %v154_v29 = vadd.f32 %v153_v23, %v152_v24  ;;  %v160_v30 = vadd.f32 %v159_v26, %v157_v25 }
  0x3f   :  { %v162_v31 = vmul.f32 %v161_v27, %v141_v28 }
  0x40   :  { %v155_v33 = vmax.f32 %v154_v29, 0.0 }
  0x41   :  { %v163_v34 = vadd.f32 %v162_v31, %v160_v30 }
  0x42   :  { %v165_v35 = vmul.f32 %v164_v32, %v155_v33 }
  0x44   :  { %v166_v37 = vadd.f32 %v165_v35, %v163_v34 }
  0x46   :  { %v168_v38 = vadd.f32 %v167_v36, %v166_v37 }
  0x48   :  { %169 = vst [vmem:[#allocation7] sm:$0xff] %v168_v38 }
  0x49   :  { %269 = shalt.err (!%p266_p1)
}
  0x4a   :  { %s270_s1 = scalar_lea.hbm %s431_s2, 128 }
  0x4b   :  { %p271_p2 = scmp.ne.s32.totalorder %s431_s2, %s270_s1  ;;  %p274_p3 = scmp.lt.u32.totalorder %s270_s1, %s431_s2 }
  0x4d   :  { %p276_p4 = pnand %p274_p3, %p271_p2 }
  0x4f   :  { %279 = shalt.err (!%p276_p4)
}
  0x50   :  { %179 = dma.vmem_to_hbm [thread:$0]  %s177_s12, 128, %s431_s2, [#allocation6]  }
  0x51   :  { %284 = dma.done.wait [#allocation6], 128  }
  0x52   :  { %285 = vsyncadd [#allocation6], 4294967168 }
  0x53   :  { %183 = vsyncpa [#allocation5], 1 }
  0x54   :  { %184 = vsyncpa [#allocation6], 1 }

</bundles_post_ra>
